<compile_context>
chip_gen: v7x
topology: tpu7x:2x2x1
jax: 0.10.0
libtpu: 0.0.40
codegen_flags: <defaults>
</compile_context>

<pallas_src>
import jax
import jax.numpy as jnp
from jax.experimental import pallas as pl
from jax.experimental.pallas import tpu as pltpu


def _round_up(x, m):
    return ((x + m - 1) // m) * m


# Conservative "keep whole _G resident in VMEM" budget (v7x has 64 MiB VMEM,
# 32 MiB default scoped; v5e/v6e have 128 MiB).
_RESIDENT_VMEM_BUDGET = 24 * 1024 * 1024


# --------------------------- resident-G slab kernel ---------------------------

def _gdag_resident_kernel(idx_ref, g_ref, mask_ref, o_ref):
    """Gather + mask a whole (tb, p*p) slab of DAGs in one shot.

    idx_ref : VMEM (tb, 1) int32 — DAG indices for this slab.
    g_ref   : VMEM (K, p*p)      — whole flattened _G, resident (single copy).
    mask_ref: VMEM (1, p*p) f32  — flattened (1 - eye(p)).
    o_ref   : VMEM (tb, p*p)     — lane-dense output slab (one full store).
    """
    tb = o_ref.shape[0]
    K = g_ref.shape[0]
    idx_blk = idx_ref[...]                                      # (tb, 1) int32
    iota = jax.lax.broadcasted_iota(jnp.int32, (tb, K), 1)      # (tb, K)
    one_hot = (iota == idx_blk).astype(g_ref.dtype)             # (tb, K)
    # One-hot row gather on the MXU. HIGHEST precision keeps the selection
    # bit-exact for f32 (avoids the default single-pass bf16 truncation).
    slab = jnp.dot(one_hot, g_ref[...],
                   preferred_element_type=jnp.float32,
                   precision=jax.lax.Precision.HIGHEST)         # (tb, pp) f32
    # Mask applied once per slab (NOT per row, and NOT via a program_id==0
    # scratch trick — unsafe under dimension_semantics=("parallel",)).
    o_ref[...] = (slab * mask_ref[...]).astype(o_ref.dtype)


def _forward_resident(g_flat, mask, idx_i, B, K, pp, dtype, itemsize, max_tb):
    # Dtype-aware, sublane-aligned slab height; aim for ~1 MiB of output per
    # grid step, but never pad far beyond the real batch and keep the in-kernel
    # (tb, K) one-hot under a small VMEM budget.
    sub = max(8, 32 // itemsize)                  # 8 f32 / 16 bf16 / 32 int8
    lane = lambda n: _round_up(n, 128)
    row_bytes = pp * itemsize
    tb = max(sub, min(max_tb, (1 << 20) // max(row_bytes, 1)))
    tb = max(sub, (tb // sub) * sub)
    onehot_row_bytes = lane(K) * 4
    tb_onehot_max = max(sub, ((2 << 20) // onehot_row_bytes) // sub * sub)
    tb = min(tb, tb_onehot_max)
    tb = min(tb, _round_up(B, sub))
    b_pad = _round_up(B, tb)
    n_steps = b_pad // tb

    if b_pad != B:
        idx_i = jnp.concatenate([idx_i, jnp.zeros((b_pad - B,), jnp.int32)])
    idx_col = idx_i.reshape(b_pad, 1)

    # VMEM budget: single-copy resident G + mask, double-buffered idx/out
    # pipeline blocks, plus the in-kernel one-hot and f32 slab temporaries.
    est = (_round_up(K, 8) * lane(pp) * itemsize          # resident G
           + 8 * lane(pp) * 4                             # resident mask
           + 2 * tb * 128 * 4                             # idx blocks (x2)
           + 2 * tb * lane(pp) * itemsize                 # out blocks (x2)
           + tb * lane(K) * 4                             # one-hot temp
           + tb * lane(pp) * 4)                           # f32 slab temp
    vmem_limit = max(32 * 1024 * 1024, int(est * 1.25) + (4 << 20))

    cost = pl.CostEstimate(
        flops=int(2 * b_pad * K * pp),
        transcendentals=0,
        bytes_accessed=int((K * pp + b_pad * pp) * itemsize + 4 * (b_pad + pp)),
    )

    return pl.pallas_call(
        _gdag_resident_kernel,
        out_shape=jax.ShapeDtypeStruct((b_pad, pp), dtype),
        grid=(n_steps,),
        in_specs=[
            pl.BlockSpec((tb, 1), lambda b: (b, 0)),                  # idx slab
            pl.BlockSpec(memory_space=pltpu.MemorySpace.VMEM),        # resident G
            pl.BlockSpec(memory_space=pltpu.MemorySpace.VMEM),        # resident mask
        ],
        out_specs=pl.BlockSpec((tb, pp), lambda b: (b, 0)),
        compiler_params=pltpu.CompilerParams(
            dimension_semantics=("parallel",),       # independent batch slabs
            vmem_limit_bytes=vmem_limit,
        ),
        cost_estimate=cost,
    )(idx_col, g_flat, mask)


# ------------------- fallback: data-dependent row gather ----------------------

def _gdag_gather_kernel(idx_ref, g_ref, mask_ref, o_ref):
    """Copy + mask one selected (1, 1, p*p) row; the gather itself is done by
    the scalar-prefetch driven index_map (only selected rows cross HBM)."""
    del idx_ref  # consumed by the index_map
    o_ref[...] = (g_ref[...].astype(jnp.float32) * mask_ref[...]).astype(o_ref.dtype)


def _forward_gather(g_flat, mask, idx_i, B, K, pp, dtype, itemsize):
    g3 = g_flat.reshape(K, 1, pp)

    cost = pl.CostEstimate(
        flops=0,
        transcendentals=0,
        bytes_accessed=int(2 * B * pp * itemsize + 4 * (B + pp)),
    )

    out = pl.pallas_call(
        _gdag_gather_kernel,
        out_shape=jax.ShapeDtypeStruct((B, 1, pp), dtype),
        grid_spec=pltpu.PrefetchScalarGridSpec(
            num_scalar_prefetch=1,                 # idx lands in SMEM
            grid=(B,),
            in_specs=[
                # DMA only the selected row of _G each step.
                pl.BlockSpec((1, 1, pp), lambda b, idx_ref: (idx_ref[b], 0, 0)),
                # Off-diagonal mask, resident (single copy).
                pl.BlockSpec(memory_space=pltpu.MemorySpace.VMEM),
            ],
            out_specs=pl.BlockSpec((1, 1, pp), lambda b, idx_ref: (b, 0, 0)),
        ),
        compiler_params=pltpu.CompilerParams(
            dimension_semantics=("arbitrary",),
        ),
        cost_estimate=cost,
    )(idx_i, g3, mask)
    return out.reshape(B, pp)


# ----------------------------------- API --------------------------------------

def g_dag_forward(G_param, idx, *, max_tb=1024, reshape_output=True,
                  force_gather=False):
    """Pallas implementation of G_DAG.forward: (_G * (1 - eye(p)))[idx].

    G_param: [K, p, p] raw parameter (_G).
    idx:     [B] integer indices into the K axis (negative indices wrap).
    returns: [B, p, p]  (or lane-dense [B, p*p] if reshape_output=False).
    """
    K, p, _ = G_param.shape
    B = int(idx.shape[0])
    pp = p * p
    dtype = G_param.dtype
    itemsize = jnp.dtype(dtype).itemsize

    # PyTorch G[idx] wraps negative indices; emulate that, then clamp so a bad
    # index can never reach past the K axis.
    # TODO(synk): PyTorch raises on out-of-range indices; we clamp instead.
    idx_i = idx.astype(jnp.int32)
    idx_i = jnp.where(idx_i < 0, idx_i + K, idx_i)
    idx_i = jnp.clip(idx_i, 0, K - 1)

    # Lane-dense layout: flatten (p, p) -> p*p so every store uses full lanes.
    g_flat = G_param.reshape(K, pp)
    mask = (1.0 - jnp.eye(p, dtype=jnp.float32)).reshape(1, pp)

    resident_bytes = K * pp * itemsize
    use_resident = (
        not force_gather
        and resident_bytes <= _RESIDENT_VMEM_BUDGET      # v7x-safe threshold
        # When K >> batch, moving only the selected rows across HBM (and
        # skipping the O(B*K) one-hot MXU work) beats full residency.
        and K <= max(256, 4 * B)
    )

    if use_resident:
        out_flat = _forward_resident(g_flat, mask, idx_i, B, K, pp, dtype,
                                     itemsize, max_tb)
    else:
        out_flat = _forward_gather(g_flat, mask, idx_i, B, K, pp, dtype,
                                   itemsize)

    out_flat = out_flat[:B]
    if reshape_output:
        # NOTE: for p < 128 this reshape is an XLA relayout (p*p lanes -> p);
        # callers that can consume the lane-dense (B, p*p) layout should pass
        # reshape_output=False and fuse the reshape into the consumer.
        return out_flat.reshape(B, p, p)
    return out_flat


def init_g_dag_params(key, num_dags, p, dtype=jnp.float32):
    """Deterministic stand-in for the PyTorch __init__ (randn for _G, rand for _T)."""
    k_g, k_t = jax.random.split(key)
    _G = jax.random.normal(k_g, (num_dags, p, p), dtype=dtype)   # torch.randn
    _T = jax.random.uniform(k_t, (1, p, p), dtype=dtype)         # torch.rand (unused in forward)
    return _G, _T


if __name__ == "__main__":
    num_dags, p = 4, 16
    key = jax.random.PRNGKey(0)
    _G, _T = init_g_dag_params(key, num_dags, p)

    # Example forward call: select a small batch of DAGs by index (-1 wraps,
    # matching PyTorch negative-index semantics).
    idx = jnp.array([0, 2, 1, 3, -1, 0, 1, 1], dtype=jnp.int32)

    # Pure-JAX reference: G = _G * (1 - eye(p)); out_ref = G[idx]
    mask = 1.0 - jnp.eye(p, dtype=_G.dtype)
    ref = (_G * mask[None, :, :])[idx]

    # Resident (one-hot MXU gather) path.
    out = jax.block_until_ready(g_dag_forward(_G, idx))
    assert out.shape == (idx.shape[0], p, p), out.shape
    assert jnp.allclose(out, ref, atol=1e-6, rtol=0.0), "resident path mismatch"

    # Fallback (scalar-prefetch row gather) path, forced for coverage.
    out2 = jax.block_until_ready(g_dag_forward(_G, idx, force_gather=True))
    assert out2.shape == (idx.shape[0], p, p), out2.shape
    assert jnp.allclose(out2, ref, atol=0.0, rtol=0.0), "gather path mismatch"

    print("KERNEL_OK")
</pallas_src>

<mosaic_0001>
module attributes {stable_mosaic.version = 11 : i64} {
  func.func @_gdag_resident_kernel(%arg0: i32, %arg1: memref<8x1xi32, #tpu.memory_space<vmem>>, %arg2: memref<4x256xf32, #tpu.memory_space<vmem>>, %arg3: memref<1x256xf32, #tpu.memory_space<vmem>>, %arg4: memref<8x256xf32, #tpu.memory_space<vmem>>) attributes {dimension_semantics = [#tpu.dimension_semantics<parallel>], iteration_bounds = array<i64: 1>, scalar_prefetch = 0 : i64, scratch_operands = 0 : i64, tpu.core_type = #tpu.core_type<tc>, window_params = [{transform_indices = @transform_0, window_bounds = array<i64: 8, 1>}, {pipeline_mode = #tpu.pipeline_mode<synchronous>, transform_indices = @transform_1, window_bounds = array<i64: 4, 256>}, {pipeline_mode = #tpu.pipeline_mode<synchronous>, transform_indices = @transform_2, window_bounds = array<i64: 1, 256>}, {transform_indices = @transform_3, window_bounds = array<i64: 8, 256>}]} {
    %c0 = arith.constant 0 : index
    %c0_0 = arith.constant 0 : index
    %0 = vector.load %arg1[%c0, %c0_0] : memref<8x1xi32, #tpu.memory_space<vmem>>, vector<8x1xi32>
    %1 = tpu.iota {dimensions = array<i32: 1>} : vector<8x4xi32>
    %2 = vector.broadcast %0 : vector<8x1xi32> to vector<8x4xi32>
    %3 = arith.cmpi eq, %1, %2 : vector<8x4xi32>
    %4 = arith.extui %3 : vector<8x4xi1> to vector<8x4xi32>
    %5 = arith.sitofp %4 : vector<8x4xi32> to vector<8x4xf32>
    %c0_1 = arith.constant 0 : index
    %c0_2 = arith.constant 0 : index
    %6 = vector.load %arg2[%c0_1, %c0_2] : memref<4x256xf32, #tpu.memory_space<vmem>>, vector<4x256xf32>
    %cst = arith.constant dense<0.000000e+00> : vector<8x256xf32>
    %7 = tpu.matmul %5, %6, %cst {dimension_numbers = #tpu.dot_dimension_numbers<[1], [0], [0], [1], [0, 0, 1, 1], [], []>, precision = #tpu.contract_precision<fp32>} : vector<8x4xf32>, vector<4x256xf32>, vector<8x256xf32> -> vector<8x256xf32>
    %c0_3 = arith.constant 0 : index
    %c0_4 = arith.constant 0 : index
    %8 = vector.load %arg3[%c0_3, %c0_4] : memref<1x256xf32, #tpu.memory_space<vmem>>, vector<1x256xf32>
    %9 = vector.broadcast %8 : vector<1x256xf32> to vector<8x256xf32>
    %10 = arith.mulf %7, %9 : vector<8x256xf32>
    %c0_5 = arith.constant 0 : index
    %c0_6 = arith.constant 0 : index
    %11 = vector.load %arg4[%c0_5, %c0_6] : memref<8x256xf32, #tpu.memory_space<vmem>>, vector<8x256xf32>
    tpu.vector_store %arg4[%c0_5, %c0_6], %10 {strides = array<i32>} : memref<8x256xf32, #tpu.memory_space<vmem>>, vector<8x256xf32>,
    return
  }
  func.func @transform_0(%arg0: i32) -> (i32, i32) {
    %c0_i32 = arith.constant 0 : i32
    %c0_i32_0 = arith.constant 0 : i32
    return %arg0, %c0_i32 : i32, i32
  }
  func.func @transform_1(%arg0: i32) -> (i32, i32) {
    %c0_i32 = arith.constant 0 : i32
    %c0_i32_0 = arith.constant 0 : i32
    %c0_i32_1 = arith.constant 0 : i32
    return %c0_i32, %c0_i32_0 : i32, i32
  }
  func.func @transform_2(%arg0: i32) -> (i32, i32) {
    %c0_i32 = arith.constant 0 : i32
    %c0_i32_0 = arith.constant 0 : i32
    %c0_i32_1 = arith.constant 0 : i32
    return %c0_i32, %c0_i32_0 : i32, i32
  }
  func.func @transform_3(%arg0: i32) -> (i32, i32) {
    %c0_i32 = arith.constant 0 : i32
    %c0_i32_0 = arith.constant 0 : i32
    return %arg0, %c0_i32 : i32, i32
  }
}

</mosaic_0001>

<bundles_post_ra>
// kernel: tpu_custom_call.1
= control target key start
LH: loop header
LB: loop body
LE: loop exit
PB: predicated region body
PF: predicated region fallthrough
CT: control target
= control target key end

     0   :  { %s622_s0 = inlined_call_operand.vmem [shape: s32[8,1], index: 0, kind: input, shape index: {}]   ;;  %s623_s1 = inlined_call_operand.vmem [shape: f32[4,256], index: 1, kind: input, shape index: {}]   ;;  %s624_s2 = inlined_call_operand.vmem [shape: f32[1,256], index: 2, kind: input, shape index: {}]   ;;  %s625_s3 = inlined_call_operand.hbm [shape: f32[8,256], index: 3, kind: output, shape index: {}]  }
   0x1   :  { %v15_v0 = vld [vmem:[%s622_s0] sm:$0xff] }
   0x2   :  { %8 = vsyncpa [#allocation3], 0  ;;  %v574_v1 = vmov 0   ;;  %v24_v2 = vld [vmem:[%s623_s1] sm:$0xff]  ;;  %v575_v3 = vmov 0.0   ;;  %vm31_vm0 = vcmask 1043456   ;;  %v16_v13 = vlaneseq }
   0x3   :  { %548 = vset.pattern.permute.xlu0 %v574_v1  ;;  %339 = vmatprep.mubr.f32.mxu0 %v575_v3  ;;  %v26_v4 = vcombine.high %v24_v2, %v24_v2  ;;  %v32_v7 = vsel %vm31_vm0, %v24_v2, 0  ;;  %vm27_vm1 = vcmask 31744   ;;  %v501_v29 = vld [vmem:[%s624_s2] sm:$0x3]  ;;  %s576_s16 = smov [#allocation2]  }
   0x4   :  { %19 = vperm.xlu0 %548, %v15_v0   ;;  %102 = vmatprep.mubr.f32.mxu1 %v575_v3  ;;  %v38_v8 = vand.u32 4294901760, %v32_v7  ;;  %v17_v14 = vand.u32 127, %v16_v13  ;;  %v504_v26 = vshrl.u32 %v16_v13, 7  ;;  %s523_s17 = sshll.u32 %s576_s16, 4  ;;  %s524_s17 = int_to_ptr.vmem [resolvable:$true] %s523_s17 }
   0x5   :  { %v34_v5 = vsel %vm31_vm0, %v26_v4, 0  ;;  %s550_s18 = scalar_lea.vmem %s524_s17, 256  ;;  %p555_p1 = scmp.lt.s32.totalorder %s524_s17, %s524_s17 }
   0x6   :  { %v36_v6 = vand.u32 4294901760, %v34_v5  ;;  %v121_v15 = vsub.f32 %v32_v7, %v38_v8  ;;  %v505_v27 = vsub.s32 0, %v504_v26  ;;  %v509_v30 = vsub.s32 1, %v504_v26  ;;  %p551_p0 = scmp.ne.s32.totalorder %s524_s17, %s550_s18  ;;  %p556_p2 = scmp.lt.s32.totalorder %s550_s18, %s550_s18 }
   0x8   :  { %274 = vmatprep.subr.mxu0 %v36_v6  ;;  %37 = vmatprep.subr.mxu1 %v36_v6  ;;  %v115_v9 = vsub.f32 %v34_v5, %v36_v6  ;;  %v122_v17 = vand.u32 4294901760, %v121_v15  ;;  %v506_v32 = vrot.slane %v501_v29, %v505_v27  ;;  %v510_v34 = vrot.slane %v501_v29, %v509_v30  ;;  %p557_p3 = por %p556_p2, %p555_p1 }
   0x9   :  { %276 = vmatpush1.msra.mxu0 %v38_v8  ;;  %39 = vmatpush1.msra.mxu1 %v38_v8 }
   0xa   :  { %v116_v10 = vand.u32 4294901760, %v115_v9  ;;  %v123_v21 = vsub.f32 %v121_v15, %v122_v17  ;;  %p558_p4 = pnand %p557_p3, %p551_p0 }
   0xc   :  { %v117_v11 = vsub.f32 %v115_v9, %v116_v10  ;;  %352 = vmatprep.subr.mxu0 %v116_v10  ;;  %v124_v24 = vand.u32 4294901760, %v123_v21 }
   0xe   :  { %v118_v12 = vand.u32 4294901760, %v117_v11 }
  0x10   :  { %119 = vmatprep.subr.mxu1 %v118_v12 }
  0x83   :  { %v20_v16 = vpop.permute.xlu0 %19 }
  0x84   :  { %vm21_vm2 = vcmp.eq.s32.totalorder %v17_v14, %v20_v16 }
  0x85   :  { %v531_v18 = vsel %vm21_vm2, 1.0, %v575_v3 }
  0x86   :  { %v29_v19 = vsel %vm27_vm1, %v531_v18, 0 }
  0x87   :  { %v104_v20 = vsub.f32 %v29_v19, %v29_v19 }
  0x89   :  { %v105_v22 = vand.u32 4294901760, %v104_v20 }
  0x8b   :  { %343 = vmatmul.mubr.f32.vlgmr.msra.gmra.mrb[0].mxu0 %v105_v22  ;;  %v106_v23 = vsub.f32 %v104_v20, %v105_v22 }
  0x8c   :  { %356 = vmatpush1.msra.mxu0 %v122_v17  ;;  %419 = vmatprep.mubr.f32.mxu0 %v575_v3 }
  0x8d   :  { %v107_v25 = vand.u32 4294901760, %v106_v23  ;;  %428 = vmatprep.subr.mxu0 %v36_v6 }
  0x8f   :  { %108 = vmatmul.mubr.f32.vlgmr.msra.gmra.mrb[0].mxu1 %v107_v25 }
  0x90   :  { %125 = vmatpush1.msra.mxu1 %v124_v24  ;;  %188 = vmatprep.mubr.f32.mxu1 %v575_v3 }
  0x91   :  { %198 = vmatprep.subr.mxu1 %v115_v9 }
  0x93   :  { %533 = vmatmul.mubr.msk.f32.vlgmr.msra.gmra.mrb[0].mxu0 %vm27_vm1, %v531_v18 }
  0x94   :  { %430 = vmatpush1.msra.mxu0 %v38_v8  ;;  %493 = vmatprep.mubr.f32.mxu0 %v575_v3 }
  0x97   :  { %532 = vmatmul.mubr.msk.f32.vlgmr.msra.gmra.mrb[0].mxu1 %vm27_vm1, %v531_v18 }
  0x98   :  { %201 = vmatpush1.msra.mxu1 %v121_v15  ;;  %264 = vmatprep.mubr.f32.mxu1 %v575_v3 }
  0x9b   :  { %534 = vmatmul.mubr.msk.f32.vlgmr.msra.gmra.mrb[0].mxu0 %vm27_vm1, %v531_v18 }
  0x9f   :  { %267 = vmatmul.mubr.f32.vlgmr.msra.gmra.mrb[0].mxu1 %v104_v20 }
 0x16e   :  { %v496_v28 = vpop.f32.mrb[0].mxu0 }
 0x16f   :  { %v498_v31 = vpop.f32.mrb[1].mxu0 }
 0x172   :  { %v268_v33 = vpop.f32.mrb[0].mxu1 }
 0x173   :  { %v535_v35 = vadd.f32 %v496_v28, %v268_v33  ;;  %v270_v36 = vpop.f32.mrb[1].mxu1 }
 0x174   :  { %v536_v37 = vadd.f32 %v498_v31, %v270_v36 }
 0x175   :  { %v513_v38 = vmul.f32 %v535_v35, %v506_v32 }
 0x176   :  { %v514_v39 = vmul.f32 %v536_v37, %v510_v34 }
 0x177   :  { %515 = vst [vmem:[#allocation2] sm:$0xff] %v513_v38 }
 0x178   :  { %516 = vst [vmem:[#allocation2 + $0x8] sm:$0xff] %v514_v39 }
 0x179   :  { %561 = shalt.err (!%p558_p4)
}
 0x17a   :  { %s562_s20 = scalar_lea.hbm %s625_s3, 256 }
 0x17b   :  { %p563_p5 = scmp.ne.s32.totalorder %s625_s3, %s562_s20  ;;  %p566_p6 = scmp.lt.u32.totalorder %s562_s20, %s625_s3 }
 0x17d   :  { %p568_p7 = pnand %p566_p6, %p563_p5 }
 0x17f   :  { %571 = shalt.err (!%p568_p7)
}
 0x180   :  { %526 = dma.vmem_to_hbm [thread:$0]  %s524_s17, 256, %s625_s3, [#allocation3]  }
 0x181   :  { %572 = dma.done.wait [#allocation3], 256  }
 0x182   :  { %573 = vsyncadd [#allocation3], 4294967040 }
 0x183   :  { %530 = vsyncpa [#allocation3], 1 }

</bundles_post_ra>
